<compile_context>
chip_gen: v6e
topology: v6e:2x2x1
jax: 0.10.0
libtpu: 0.0.40
codegen_flags: <defaults>
</compile_context>

<pallas_src>
import numpy as np
import jax
import jax.numpy as jnp
from jax import lax
from jax.experimental import pallas as pl
from jax.experimental.pallas import tpu as pltpu


# On TPU the MXU takes bf16 operands natively (f32 accumulation).  The CPU /
# interpret fallback cannot run a BF16xBF16=F32 dot, so use f32 there.
_ON_TPU = jax.default_backend() == "tpu"
COMPUTE_DTYPE = jnp.bfloat16 if _ON_TPU else jnp.float32
_IN_ISZ = np.dtype(COMPUTE_DTYPE).itemsize
_OUT_ISZ = np.dtype(COMPUTE_DTYPE).itemsize


# ----------------------------------------------------------------------------
# Pallas kernel: fused matmul + bias [+ relu] [+ residual add] on a lane-dense
# (Cout, tm) tile.  Single K-collapsed contraction (downsample already merged
# into the K axis host-side), f32 epilogue, narrow store.
# ----------------------------------------------------------------------------
def _make_fused_kernel(relu, has_res):
    def kernel(x_ref, w_ref, b_ref, *rest):
        rest = list(rest)
        if has_res:
            res_ref = rest.pop(0)
        (o_ref,) = rest

        y = jnp.dot(w_ref[...], x_ref[...],
                    preferred_element_type=jnp.float32)      # MXU, f32 accumulate
        y = y + b_ref[...]                                    # folded BN bias (f32)
        if relu:
            y = jnp.maximum(y, 0.0)
        if has_res:                                           # identity residual
            y = y + res_ref[...].astype(jnp.float32)
        o_ref[...] = y.astype(o_ref.dtype)                    # narrow (bf16) store

    return kernel


def _round_up(x, m):
    return (x + m - 1) // m * m


def _pick_tiles(M, K, Cout, has_res, tm_max, vmem_budget=40 << 20):
    """Pick lane tile tm (multiple of 128) and padded lane extent Mp (multiple of tm)."""
    Mp128 = _round_up(M, 128)
    # streamed bytes per lane (x2 double buffering) + resident weights/bias
    per_lane = 2 * (K * _IN_ISZ + Cout * _OUT_ISZ + (Cout * _IN_ISZ if has_res else 0))
    resident = 2 * Cout * K * _IN_ISZ + 2 * Cout * 4
    tm_budget = max(128, (vmem_budget - resident) // max(per_lane, 1))
    tm = min(tm_max, tm_budget, Mp128)
    tm = max(128, (tm // 128) * 128)
    # prefer >= 2 grid steps when M permits (v7x shards "parallel" axes over 2 TCs)
    half = ((Mp128 // 2) // 128) * 128
    if half >= 128:
        tm = min(tm, half)
    Mp = _round_up(M, tm)
    est_vmem = resident + per_lane * tm
    return tm, Mp, est_vmem


def conv_mm(xT, wT, bias, *, relu=False, residual=None, tm_max=512):
    """Fused conv-as-matmul in transposed (channel-rows, spatial-lanes) layout.

    xT       : (K, M)     im2col'd activation (downsample input may be K-concat'd)
    wT       : (Cout, K)  weights with the post-conv BN scale folded in
    bias     : (Cout,)    f32 post-conv BN bias (downsample bias may be folded in)
    residual : optional (Cout, M) identity path to add (streamed as COMPUTE_DTYPE)
    returns  : (Cout, M)  COMPUTE_DTYPE
    """
    K, M = xT.shape
    Cout = wT.shape[0]
    has_res = residual is not None

    tm, Mp, est_vmem = _pick_tiles(M, K, Cout, has_res, tm_max)
    grid = Mp // tm
    pad = Mp - M
    if pad:  # zero lanes -> unmasked lane-dense stores; sliced off below
        xT = jnp.pad(xT, ((0, 0), (0, pad)))
        if has_res:
            residual = jnp.pad(residual, ((0, 0), (0, pad)))

    in_specs = [
        pl.BlockSpec((K, tm), lambda i: (0, i)),      # streamed activation tile
        pl.BlockSpec((Cout, K), lambda i: (0, 0)),    # weights: resident across grid
        pl.BlockSpec((Cout, 1), lambda i: (0, 0)),    # bias:    resident across grid
    ]
    args = [xT.astype(COMPUTE_DTYPE), wT.astype(COMPUTE_DTYPE),
            bias.reshape(Cout, 1).astype(jnp.float32)]
    if has_res:
        in_specs.append(pl.BlockSpec((Cout, tm), lambda i: (0, i)))
        args.append(residual.astype(COMPUTE_DTYPE))

    bytes_accessed = (K * Mp * _IN_ISZ + Cout * K * _IN_ISZ + Cout * 4
                      + Cout * Mp * _OUT_ISZ
                      + (Cout * Mp * _IN_ISZ if has_res else 0))
    cost = pl.CostEstimate(flops=2 * Cout * K * Mp, transcendentals=0,
                           bytes_accessed=bytes_accessed)
    # above the 16/32 MiB scoped defaults, capped at ~48 MiB (v7x has 64 MiB VMEM)
    vmem_limit = int(min(48 << 20, max(32 << 20, 2 * est_vmem)))

    out = pl.pallas_call(
        _make_fused_kernel(relu, has_res),
        out_shape=jax.ShapeDtypeStruct((Cout, Mp), COMPUTE_DTYPE),
        grid=(grid,),
        in_specs=in_specs,
        out_specs=pl.BlockSpec((Cout, tm), lambda i: (0, i)),
        compiler_params=pltpu.CompilerParams(
            dimension_semantics=("parallel",),
            vmem_limit_bytes=vmem_limit),
        cost_estimate=cost,
    )(*args)
    return out[:, :M] if pad else out


# ----------------------------------------------------------------------------
# Host-side glue (pure data movement, fused by XLA into producer fusions)
# ----------------------------------------------------------------------------
def im2col_T(x_cnhw, stride):
    """3x3 / pad-1 im2col in transposed layout.

    x_cnhw: (C, N, H, W) -> (9*C, N*Ho*Wo); row order is (kh, kw, c).
    """
    C, N, H, W = x_cnhw.shape
    Ho = (H + 2 - 3) // stride + 1
    Wo = (W + 2 - 3) // stride + 1
    xp = jnp.pad(x_cnhw, ((0, 0), (0, 0), (1, 1), (1, 1)))
    taps = []
    for kh in range(3):
        for kw in range(3):
            sl = xp[:, :, kh:kh + stride * (Ho - 1) + 1:stride,
                          kw:kw + stride * (Wo - 1) + 1:stride]
            taps.append(sl.reshape(C, N * Ho * Wo))
    return jnp.concatenate(taps, axis=0), (Ho, Wo)


def bn_fold(gamma, beta, mean, var, eps=1e-5):
    scale = gamma / jnp.sqrt(var + eps)
    bias = beta - mean * scale
    return scale, bias


def make_params(key, in_c, out_c):
    k1, k2, k3 = jax.random.split(key, 3)
    # conv weights in HWIO layout (equivalent to PyTorch OIHW transposed)
    w1 = 0.1 * jax.random.normal(k1, (3, 3, in_c, out_c), jnp.float32)
    w2 = 0.1 * jax.random.normal(k2, (3, 3, out_c, out_c), jnp.float32)
    w_ds = 0.1 * jax.random.normal(k3, (1, 1, in_c, out_c), jnp.float32)

    def bn_params(c, tag):
        gamma = 1.0 + 0.1 * jnp.arange(c, dtype=jnp.float32)
        beta = 0.05 * jnp.arange(c, dtype=jnp.float32) - 0.1 * tag
        mean = 0.02 * jnp.arange(c, dtype=jnp.float32) + 0.01 * tag
        var = 1.0 + 0.03 * jnp.arange(c, dtype=jnp.float32)
        return bn_fold(gamma, beta, mean, var)

    return {
        "w1": w1, "w2": w2, "w_ds": w_ds,
        "bn1": bn_params(in_c, 0),
        "bn2": bn_params(out_c, 1),
        "bn_last": bn_params(out_c, 2),
        "bn_ds": bn_params(out_c, 3),
    }


# ----------------------------------------------------------------------------
# BasicBlock forward (Pallas-backed, 2 kernel launches)
# ----------------------------------------------------------------------------
def basic_block_forward(x_nchw, params, stride):
    N, Cin, H, W = x_nchw.shape
    Cout = params["w1"].shape[-1]
    downsample = (stride > 1) or (Cin != Cout)

    s1, b1 = params["bn1"]
    s2, b2 = params["bn2"]
    s_last, b_last = params["bn_last"]
    sd, bd = params["bn_ds"]

    # channel-major layout (C, N, H, W): flattened spatial lands on the lane axis.
    x_c = jnp.transpose(x_nchw, (1, 0, 2, 3))

    # ---- launch 1: bn1 -> 3x3/stride conv -> bn2 -> relu ------------------------
    # bn1 is applied BEFORE the zero padding (exactly the module's order), fused by
    # XLA into the im2col gather; bn2's scale is folded exactly into conv1 weights.
    y1 = x_c * s1[:, None, None, None] + b1[:, None, None, None]
    x1T, (Ho, Wo) = im2col_T(y1, stride)                       # (9*Cin, M)
    M = N * Ho * Wo
    w1T = (jnp.transpose(params["w1"], (3, 0, 1, 2)).reshape(Cout, 9 * Cin)
           * s2[:, None])
    hT = conv_mm(x1T, w1T, b2, relu=True)                      # (Cout, M) bf16

    # ---- launch 2: conv2 + bn_last + (fused 1x1 downsample | identity residual) --
    x2T, _ = im2col_T(hT.reshape(Cout, N, Ho, Wo), 1)          # (9*Cout, M) bf16
    w2T = (jnp.transpose(params["w2"], (3, 0, 1, 2)).reshape(Cout, 9 * Cout)
           * s_last[:, None])
    if downsample:
        # merge the 1x1/stride downsample conv into the same contraction: concat
        # its strided input along K, its (bn_ds-folded) weights along K, and fold
        # bn_ds bias into the combined bias -> single MXU dot in the kernel.
        xsT = x_c[:, :, ::stride, ::stride].reshape(Cin, M)
        wdsT = params["w_ds"][0, 0].T * sd[:, None]            # (Cout, Cin)
        x_all = jnp.concatenate([x2T, xsT.astype(COMPUTE_DTYPE)], axis=0)
        w_all = jnp.concatenate([w2T, wdsT], axis=1)
        oT = conv_mm(x_all, w_all, b_last + bd)
    else:
        oT = conv_mm(x2T, w2T, b_last, residual=x_c.reshape(Cout, M))

    # back to NCHW; kept in COMPUTE_DTYPE (bf16 on TPU) per the bandwidth budget.
    return jnp.transpose(oT.reshape(Cout, N, Ho, Wo), (1, 0, 2, 3))


# ----------------------------------------------------------------------------
# Pure-JAX reference (module-faithful math, f32 lax conv) for verification
# ----------------------------------------------------------------------------
def reference_forward(x_nchw, params, stride):
    x = jnp.transpose(x_nchw, (0, 2, 3, 1))  # NHWC
    Cin = x.shape[-1]
    Cout = params["w1"].shape[-1]

    def bn(v, sb):
        s, b = sb
        return v * s + b

    def conv(v, w, st, pad):
        return lax.conv_general_dilated(
            v, w, (st, st), pad,
            dimension_numbers=("NHWC", "HWIO", "NHWC"),
            precision=lax.Precision.HIGHEST)

    y = bn(x, params["bn1"])
    y = conv(y, params["w1"], stride, [(1, 1), (1, 1)])
    y = jnp.maximum(bn(y, params["bn2"]), 0.0)
    y = conv(y, params["w2"], 1, [(1, 1), (1, 1)])
    y = bn(y, params["bn_last"])

    if stride > 1 or Cin != Cout:
        ident = bn(conv(x, params["w_ds"], stride, [(0, 0), (0, 0)]), params["bn_ds"])
    else:
        ident = x
    return jnp.transpose(y + ident, (0, 3, 1, 2))


# ----------------------------------------------------------------------------
if __name__ == "__main__":
    key = jax.random.PRNGKey(0)
    fwd = jax.jit(basic_block_forward, static_argnums=(2,))

    # bf16 MXU operands + bf16 intermediate/output stores vs a full-f32 reference.
    ATOL = RTOL = 5e-2

    def check(out, ref, shape, tag):
        assert out.shape == shape, (tag, out.shape)
        out_f = np.asarray(jnp.asarray(out, jnp.float32))
        ref_f = np.asarray(jnp.asarray(ref, jnp.float32))
        err = float(np.max(np.abs(out_f - ref_f)))
        assert np.allclose(out_f, ref_f, atol=ATOL, rtol=RTOL), (
            "%s mismatch vs reference: max abs err %g" % (tag, err))

    # 1) downsample path: in_c != out_c, stride 2
    in_c, out_c, stride = 4, 8, 2
    kx, kp, key = jax.random.split(key, 3)
    x = jax.random.normal(kx, (2, in_c, 16, 16), jnp.float32)   # NCHW like PyTorch
    params = make_params(kp, in_c, out_c)
    out = jax.block_until_ready(fwd(x, params, stride))
    ref = jax.block_until_ready(reference_forward(x, params, stride))
    check(out, ref, (2, out_c, 8, 8), "downsample path")

    # 2) identity path: in_c == out_c, stride 1 (residual passed straight through)
    in_c2 = out_c2 = 8
    kx2, kp2, key = jax.random.split(key, 3)
    x2 = jax.random.normal(kx2, (2, in_c2, 16, 16), jnp.float32)
    params2 = make_params(kp2, in_c2, out_c2)
    out2 = jax.block_until_ready(fwd(x2, params2, 1))
    ref2 = jax.block_until_ready(reference_forward(x2, params2, 1))
    check(out2, ref2, (2, out_c2, 16, 16), "identity path")

    print("KERNEL_OK")
</pallas_src>

<mosaic_0001>
module attributes {stable_mosaic.version = 11 : i64} {
  func.func @kernel(%arg0: i32, %arg1: memref<36x128xf32, #tpu.memory_space<vmem>>, %arg2: memref<8x36xf32, #tpu.memory_space<vmem>>, %arg3: memref<8x1xf32, #tpu.memory_space<vmem>>, %arg4: memref<8x128xf32, #tpu.memory_space<vmem>>) attributes {dimension_semantics = [#tpu.dimension_semantics<parallel>], iteration_bounds = array<i64: 1>, scalar_prefetch = 0 : i64, scratch_operands = 0 : i64, tpu.core_type = #tpu.core_type<tc>, window_params = [{transform_indices = @transform_0, window_bounds = array<i64: 36, 128>}, {pipeline_mode = #tpu.pipeline_mode<synchronous>, transform_indices = @transform_1, window_bounds = array<i64: 8, 36>}, {pipeline_mode = #tpu.pipeline_mode<synchronous>, transform_indices = @transform_2, window_bounds = array<i64: 8, 1>}, {transform_indices = @transform_3, window_bounds = array<i64: 8, 128>}]} {
    %c0 = arith.constant 0 : index
    %c0_0 = arith.constant 0 : index
    %0 = vector.load %arg2[%c0, %c0_0] : memref<8x36xf32, #tpu.memory_space<vmem>>, vector<8x36xf32>
    %c0_1 = arith.constant 0 : index
    %c0_2 = arith.constant 0 : index
    %1 = vector.load %arg1[%c0_1, %c0_2] : memref<36x128xf32, #tpu.memory_space<vmem>>, vector<36x128xf32>
    %cst = arith.constant dense<0.000000e+00> : vector<8x128xf32>
    %2 = tpu.matmul %0, %1, %cst {dimension_numbers = #tpu.dot_dimension_numbers<[1], [0], [0], [1], [0, 0, 1, 1], [], []>} : vector<8x36xf32>, vector<36x128xf32>, vector<8x128xf32> -> vector<8x128xf32>
    %c0_3 = arith.constant 0 : index
    %c0_4 = arith.constant 0 : index
    %3 = vector.load %arg3[%c0_3, %c0_4] : memref<8x1xf32, #tpu.memory_space<vmem>>, vector<8x1xf32>
    %4 = vector.broadcast %3 : vector<8x1xf32> to vector<8x128xf32>
    %5 = arith.addf %2, %4 : vector<8x128xf32>
    %cst_5 = arith.constant 0.000000e+00 : f32
    %6 = vector.broadcast %cst_5 : f32 to vector<8x128xf32>
    %7 = arith.maximumf %5, %6 : vector<8x128xf32>
    %c0_6 = arith.constant 0 : index
    %c0_7 = arith.constant 0 : index
    %8 = vector.load %arg4[%c0_6, %c0_7] : memref<8x128xf32, #tpu.memory_space<vmem>>, vector<8x128xf32>
    tpu.vector_store %arg4[%c0_6, %c0_7], %7 {strides = array<i32>} : memref<8x128xf32, #tpu.memory_space<vmem>>, vector<8x128xf32>,
    return
  }
  func.func @transform_0(%arg0: i32) -> (i32, i32) {
    %c0_i32 = arith.constant 0 : i32
    %c0_i32_0 = arith.constant 0 : i32
    return %c0_i32, %arg0 : i32, i32
  }
  func.func @transform_1(%arg0: i32) -> (i32, i32) {
    %c0_i32 = arith.constant 0 : i32
    %c0_i32_0 = arith.constant 0 : i32
    %c0_i32_1 = arith.constant 0 : i32
    return %c0_i32, %c0_i32_0 : i32, i32
  }
  func.func @transform_2(%arg0: i32) -> (i32, i32) {
    %c0_i32 = arith.constant 0 : i32
    %c0_i32_0 = arith.constant 0 : i32
    %c0_i32_1 = arith.constant 0 : i32
    return %c0_i32, %c0_i32_0 : i32, i32
  }
  func.func @transform_3(%arg0: i32) -> (i32, i32) {
    %c0_i32 = arith.constant 0 : i32
    %c0_i32_0 = arith.constant 0 : i32
    return %c0_i32, %arg0 : i32, i32
  }
}

module attributes {stable_mosaic.version = 11 : i64} {
  func.func @kernel(%arg0: i32, %arg1: memref<76x128xf32, #tpu.memory_space<vmem>>, %arg2: memref<8x76xf32, #tpu.memory_space<vmem>>, %arg3: memref<8x1xf32, #tpu.memory_space<vmem>>, %arg4: memref<8x128xf32, #tpu.memory_space<vmem>>) attributes {dimension_semantics = [#tpu.dimension_semantics<parallel>], iteration_bounds = array<i64: 1>, scalar_prefetch = 0 : i64, scratch_operands = 0 : i64, tpu.core_type = #tpu.core_type<tc>, window_params = [{transform_indices = @transform_0, window_bounds = array<i64: 76, 128>}, {pipeline_mode = #tpu.pipeline_mode<synchronous>, transform_indices = @transform_1, window_bounds = array<i64: 8, 76>}, {pipeline_mode = #tpu.pipeline_mode<synchronous>, transform_indices = @transform_2, window_bounds = array<i64: 8, 1>}, {transform_indices = @transform_3, window_bounds = array<i64: 8, 128>}]} {
    %c0 = arith.constant 0 : index
    %c0_0 = arith.constant 0 : index
    %0 = vector.load %arg2[%c0, %c0_0] : memref<8x76xf32, #tpu.memory_space<vmem>>, vector<8x76xf32>
    %c0_1 = arith.constant 0 : index
    %c0_2 = arith.constant 0 : index
    %1 = vector.load %arg1[%c0_1, %c0_2] : memref<76x128xf32, #tpu.memory_space<vmem>>, vector<76x128xf32>
    %cst = arith.constant dense<0.000000e+00> : vector<8x128xf32>
    %2 = tpu.matmul %0, %1, %cst {dimension_numbers = #tpu.dot_dimension_numbers<[1], [0], [0], [1], [0, 0, 1, 1], [], []>} : vector<8x76xf32>, vector<76x128xf32>, vector<8x128xf32> -> vector<8x128xf32>
    %c0_3 = arith.constant 0 : index
    %c0_4 = arith.constant 0 : index
    %3 = vector.load %arg3[%c0_3, %c0_4] : memref<8x1xf32, #tpu.memory_space<vmem>>, vector<8x1xf32>
    %4 = vector.broadcast %3 : vector<8x1xf32> to vector<8x128xf32>
    %5 = arith.addf %2, %4 : vector<8x128xf32>
    %c0_5 = arith.constant 0 : index
    %c0_6 = arith.constant 0 : index
    %6 = vector.load %arg4[%c0_5, %c0_6] : memref<8x128xf32, #tpu.memory_space<vmem>>, vector<8x128xf32>
    tpu.vector_store %arg4[%c0_5, %c0_6], %5 {strides = array<i32>} : memref<8x128xf32, #tpu.memory_space<vmem>>, vector<8x128xf32>,
    return
  }
  func.func @transform_0(%arg0: i32) -> (i32, i32) {
    %c0_i32 = arith.constant 0 : i32
    %c0_i32_0 = arith.constant 0 : i32
    return %c0_i32, %arg0 : i32, i32
  }
  func.func @transform_1(%arg0: i32) -> (i32, i32) {
    %c0_i32 = arith.constant 0 : i32
    %c0_i32_0 = arith.constant 0 : i32
    %c0_i32_1 = arith.constant 0 : i32
    return %c0_i32, %c0_i32_0 : i32, i32
  }
  func.func @transform_2(%arg0: i32) -> (i32, i32) {
    %c0_i32 = arith.constant 0 : i32
    %c0_i32_0 = arith.constant 0 : i32
    %c0_i32_1 = arith.constant 0 : i32
    return %c0_i32, %c0_i32_0 : i32, i32
  }
  func.func @transform_3(%arg0: i32) -> (i32, i32) {
    %c0_i32 = arith.constant 0 : i32
    %c0_i32_0 = arith.constant 0 : i32
    return %c0_i32, %arg0 : i32, i32
  }
}

</mosaic_0001>

<bundles_post_ra>
// kernel: basic_block_forward.2
= control target key start
LH: loop header
LB: loop body
LE: loop exit
PB: predicated region body
PF: predicated region fallthrough
CT: control target
= control target key end

     0   :  { %vm30_vm0 = vcmask 1043456   ;;  %v135_v0 = vmov 0.0   ;;  %vm136_vm1 = vmmov 0   ;;  %v137_v3 = vmov 0   ;;  %s182_s0 = inlined_call_operand.vmem [shape: f32[36,128], index: 0, kind: input, shape index: {}]   ;;  %s183_s2 = inlined_call_operand.vmem [shape: f32[8,1], index: 2, kind: input, shape index: {}]   ;;  %s184_s1 = inlined_call_operand.vmem [shape: f32[8,36], index: 1, kind: input, shape index: {}]   ;;  %s185_s3 = inlined_call_operand.vmem [shape: f32[8,128], index: 3, kind: output, shape index: {}]  }
   0x1   :  { %118 = vmatprep.subr.mxu0 %v135_v0  ;;  %v19_v1 = vld [vmem:[%s182_s0 + $0x20] sm:$0xf]  ;;  %v18_v2 = vld [vmem:[%s182_s0 + $0x18] sm:$0xff]  ;;  %128 = vmatprep.mubr.msk.f32.mxu0 %vm136_vm1, %v135_v0  ;;  %v17_v4 = vld [vmem:[%s182_s0 + $0x10] sm:$0xff]  ;;  %vm26_vm2 = vcmask 293888  }
   0x2   :  { %119 = vmatpush3.msk.msra.mxu0 %vm30_vm0, %v19_v1  ;;  %134 = vset.pattern.permute.xlu0 %v137_v3  ;;  %v20_v5 = vld [vmem:[%s183_s2] sm:$0xff]  ;;  %v16_v6 = vld [vmem:[%s182_s0 + $0x8] sm:$0xff] }
   0x3   :  { %120 = vmatprep.subr.mxu0 %v135_v0  ;;  %23 = vperm.xlu0 %134, %v20_v5   ;;  %v15_v7 = vld [vmem:[%s182_s0] sm:$0xff] }
   0x4   :  { %121 = vmatpush3.msra.mxu0 %v18_v2  ;;  %v14_v8 = vld [vmem:[%s184_s1] sm:$0xff] }
   0x5   :  { %122 = vmatprep.subr.mxu0 %v135_v0 }
   0x6   :  { %123 = vmatpush3.msra.mxu0 %v17_v4 }
   0x7   :  { %124 = vmatprep.subr.mxu0 %v135_v0 }
   0x8   :  { %125 = vmatpush3.msra.mxu0 %v16_v6 }
   0x9   :  { %126 = vmatprep.subr.mxu0 %v135_v0 }
   0xa   :  { %127 = vmatpush3.msra.mxu0 %v15_v7 }
   0xb   :  { %129 = vmatmul.mubr.msk.f32.vlgmr.msra.gmra.mxu0 %vm26_vm2, %v14_v8 }
  0x7e   :  { %v24_v9 = vpop.permute.xlu0 %23 }
  0xcb   :  { %v100_v10 = vpop.f32.mrf.mxu0 }
  0xcc   :  { %v101_v11 = vadd.f32 %v100_v10, %v24_v9 }
  0xcd   :  { %v130_v12 = vpop.f32.mrf.mxu0 }
  0xce   :  { %v104_v13 = vmax.f32 %v101_v11, 0.0 }
  0xd0   :  { %105 = vst [vmem:[%s185_s3] sm:$0xff] %v104_v13 }

// kernel: basic_block_forward.3
= control target key start
LH: loop header
LB: loop body
LE: loop exit
PB: predicated region body
PF: predicated region fallthrough
CT: control target
= control target key end

     0   :  { %vm35_vm0 = vcmask 1043456   ;;  %v154_v0 = vmov 0.0   ;;  %vm155_vm1 = vmmov 0   ;;  %v156_v3 = vmov 0   ;;  %s216_s0 = inlined_call_operand.vmem [shape: f32[76,128], index: 0, kind: input, shape index: {}]   ;;  %s217_s2 = inlined_call_operand.vmem [shape: f32[8,1], index: 2, kind: input, shape index: {}]   ;;  %s218_s1 = inlined_call_operand.vmem [shape: f32[8,76], index: 1, kind: input, shape index: {}]   ;;  %s219_s3 = inlined_call_operand.vmem [shape: f32[8,128], index: 3, kind: output, shape index: {}]  }
   0x1   :  { %127 = vmatprep.subr.mxu0 %v154_v0  ;;  %v24_v1 = vld [vmem:[%s216_s0 + $0x48] sm:$0xf]  ;;  %v23_v2 = vld [vmem:[%s216_s0 + $0x40] sm:$0xff]  ;;  %147 = vmatprep.mubr.msk.f32.mxu0 %vm155_vm1, %v154_v0  ;;  %v22_v4 = vld [vmem:[%s216_s0 + $0x38] sm:$0xff]  ;;  %vm31_vm2 = vcmask 621568  }
   0x2   :  { %128 = vmatpush3.msk.msra.mxu0 %vm35_vm0, %v24_v1  ;;  %153 = vset.pattern.permute.xlu0 %v156_v3  ;;  %v25_v5 = vld [vmem:[%s217_s2] sm:$0xff]  ;;  %v21_v6 = vld [vmem:[%s216_s0 + $0x30] sm:$0xff]  ;;  %v20_v7 = vld [vmem:[%s216_s0 + $0x28] sm:$0xff] }
   0x3   :  { %129 = vmatprep.subr.mxu0 %v154_v0  ;;  %28 = vperm.xlu0 %153, %v25_v5   ;;  %v19_v8 = vld [vmem:[%s216_s0 + $0x20] sm:$0xff]  ;;  %v18_v9 = vld [vmem:[%s216_s0 + $0x18] sm:$0xff]  ;;  %v17_v10 = vld [vmem:[%s216_s0 + $0x10] sm:$0xff] }
   0x4   :  { %130 = vmatpush3.msra.mxu0 %v23_v2  ;;  %v16_v11 = vld [vmem:[%s216_s0 + $0x8] sm:$0xff]  ;;  %v15_v12 = vld [vmem:[%s216_s0] sm:$0xff] }
   0x5   :  { %131 = vmatprep.subr.mxu0 %v154_v0  ;;  %v14_v13 = vld [vmem:[%s218_s1] sm:$0xff] }
   0x6   :  { %132 = vmatpush3.msra.mxu0 %v22_v4 }
   0x7   :  { %133 = vmatprep.subr.mxu0 %v154_v0 }
   0x8   :  { %134 = vmatpush3.msra.mxu0 %v21_v6 }
   0x9   :  { %135 = vmatprep.subr.mxu0 %v154_v0 }
   0xa   :  { %136 = vmatpush3.msra.mxu0 %v20_v7 }
   0xb   :  { %137 = vmatprep.subr.mxu0 %v154_v0 }
   0xc   :  { %138 = vmatpush3.msra.mxu0 %v19_v8 }
   0xd   :  { %139 = vmatprep.subr.mxu0 %v154_v0 }
   0xe   :  { %140 = vmatpush3.msra.mxu0 %v18_v9 }
   0xf   :  { %141 = vmatprep.subr.mxu0 %v154_v0 }
  0x10   :  { %142 = vmatpush3.msra.mxu0 %v17_v10 }
  0x11   :  { %143 = vmatprep.subr.mxu0 %v154_v0 }
  0x12   :  { %144 = vmatpush3.msra.mxu0 %v16_v11 }
  0x13   :  { %145 = vmatprep.subr.mxu0 %v154_v0 }
  0x14   :  { %146 = vmatpush3.msra.mxu0 %v15_v12 }
  0x15   :  { %148 = vmatmul.mubr.msk.f32.vlgmr.msra.gmra.mxu0 %vm31_vm2, %v14_v13 }
  0x7e   :  { %v29_v14 = vpop.permute.xlu0 %28 }
  0xd5   :  { %v105_v15 = vpop.f32.mrf.mxu0 }
  0xd6   :  { %v106_v16 = vadd.f32 %v105_v15, %v29_v14 }
  0xd7   :  { %v149_v17 = vpop.f32.mrf.mxu0 }
  0xd8   :  { %109 = vst [vmem:[%s219_s3] sm:$0xff] %v106_v16 }

</bundles_post_ra>
